<compile_context>
chip_gen: v7x
topology: tpu7x:2x2x1
jax: 0.10.0
libtpu: 0.0.40
codegen_flags: <defaults>
</compile_context>

<pallas_src>
import jax
import jax.numpy as jnp
from jax.experimental import pallas as pl
from jax.experimental.pallas import tpu as pltpu


def _round_up(n, m):
    return ((n + m - 1) // m) * m


def cgenerator_kernel(x_ref, lab_ref, ew_ref, w1x_ref, w2_ref, b2_ref,
                      w3_ref, b3_ref, out_ref):
    tb = x_ref.shape[0]
    cp = ew_ref.shape[0]

    # input_layer: relu(x @ w1_x + onehot(labels) @ (embed @ w1_e + b1))
    h1 = jnp.dot(x_ref[...], w1x_ref[...],
                 preferred_element_type=jnp.float32)
    onehot = (jax.lax.broadcasted_iota(jnp.int32, (tb, cp), 1)
              == lab_ref[...]).astype(jnp.float32)
    h1 = h1 + jnp.dot(onehot, ew_ref[...],
                      preferred_element_type=jnp.float32)
    h1 = jnp.maximum(h1, 0.0)

    # hidden_layer: Linear + ReLU
    h2 = jnp.dot(h1.astype(jnp.bfloat16), w2_ref[...],
                 preferred_element_type=jnp.float32) + b2_ref[...]
    h2 = jnp.maximum(h2, 0.0)

    # output_layer: Linear + Tanh (tanh in f32 for v5e; store packed bf16)
    o = jnp.dot(h2.astype(jnp.bfloat16), w3_ref[...],
                preferred_element_type=jnp.float32) + b3_ref[...]
    out_ref[...] = jnp.tanh(o).astype(out_ref.dtype)


def init_params(key, noise_size, hidden_size, image_size, num_classes):
    """Torch-equivalent parameters (weights stored as (in_features, out_features))."""
    ks = jax.random.split(key, 7)
    in1 = noise_size + num_classes

    def uni(k, shape, fan_in):
        bound = 1.0 / jnp.sqrt(fan_in)
        return jax.random.uniform(k, shape, jnp.float32, -bound, bound)

    return {
        # nn.Embedding default init: N(0, 1)
        "embed": jax.random.normal(ks[0], (num_classes, num_classes), jnp.float32),
        # nn.Linear default init: U(-1/sqrt(fan_in), 1/sqrt(fan_in))
        "w1": uni(ks[1], (in1, hidden_size), in1),
        "b1": uni(ks[2], (hidden_size,), in1),
        "w2": uni(ks[3], (hidden_size, hidden_size), hidden_size),
        "b2": uni(ks[4], (hidden_size,), hidden_size),
        "w3": uni(ks[5], (hidden_size, image_size ** 2), hidden_size),
        "b3": uni(ks[6], (image_size ** 2,), hidden_size),
    }


def prepare_params(params, noise_size, hidden_size, image_size, num_classes):
    """Split w1, fold embedding + b1 into EW, pad feature dims, cast MXU operands."""
    image_sq = image_size ** 2
    hp = _round_up(hidden_size, 128)
    op = _round_up(image_sq, 128)
    cp = _round_up(num_classes, 8)

    w1 = params["w1"]                  # (noise + C, H)
    w1_x = w1[:noise_size]             # (noise, H)
    w1_e = w1[noise_size:]             # (C, H)
    # Fold embedding AND b1 into the label branch:
    #   onehot(l) @ (embed @ w1_e + b1) == embed[l] @ w1_e + b1
    ew = params["embed"] @ w1_e + params["b1"][None, :]   # (C, H), f32

    def pad2(a, rows, cols):
        return jnp.pad(a, ((0, rows - a.shape[0]), (0, cols - a.shape[1])))

    return {
        "image_sq": image_sq,
        "num_classes": num_classes,
        "ew": pad2(ew, cp, hp).astype(jnp.float32),
        "w1x": pad2(w1_x, noise_size, hp).astype(jnp.bfloat16),
        "w2": pad2(params["w2"], hp, hp).astype(jnp.bfloat16),
        "b2": pad2(params["b2"].reshape(1, -1), 1, hp).astype(jnp.float32),
        "w3": pad2(params["w3"], hp, op).astype(jnp.bfloat16),
        "b3": pad2(params["b3"].reshape(1, -1), 1, op).astype(jnp.float32),
    }


def cgenerator_forward(x, labels, prep, out_dtype=jnp.bfloat16):
    """x: (B, noise_size) f32, labels: (B,) int."""
    B, noise = x.shape
    hp = prep["w2"].shape[0]
    op = prep["w3"].shape[1]
    cp = prep["ew"].shape[0]

    # Batch tiling: big tiles amortize the ~0.35 us fixed per-step cost; when
    # the batch allows, use >= 2 "parallel" steps so both v7x TCs are active.
    if B >= 2048:
        tb = 1024
    elif B > 8:
        tb = _round_up((B + 1) // 2, 16)   # two (even) parallel tiles
    else:
        tb = _round_up(max(B, 1), 8)       # single full-array tile
    bp = _round_up(B, tb)

    # x fed as bf16 (halves its DMA; removes the per-tile f32->bf16 pack).
    x_bf = x.astype(jnp.bfloat16)
    lab2 = labels.astype(jnp.int32).reshape(-1, 1)
    if bp != B:
        x_bf = jnp.pad(x_bf, ((0, bp - B), (0, 0)))
        lab2 = jnp.pad(lab2, ((0, bp - B), (0, 0)))

    def row(feat):                                  # batch-tiled operand
        return pl.BlockSpec((tb, feat), lambda i: (i, 0))

    def resident(r, c):                             # VMEM-resident weight
        return pl.BlockSpec((r, c), lambda i: (0, 0))

    out = pl.pallas_call(
        cgenerator_kernel,
        out_shape=jax.ShapeDtypeStruct((bp, op), out_dtype),
        grid=(bp // tb,),
        in_specs=[
            row(noise),             # x (bf16)
            row(1),                 # labels (int32)
            resident(cp, hp),       # ew = embed @ w1_e + b1 (f32)
            resident(noise, hp),    # w1_x (bf16)
            resident(hp, hp),       # w2 (bf16)
            resident(1, hp),        # b2 (f32)
            resident(hp, op),       # w3 (bf16)
            resident(1, op),        # b3 (f32)
        ],
        out_specs=row(op),
        compiler_params=pltpu.CompilerParams(
            dimension_semantics=("parallel",),
        ),
    )(x_bf, lab2, prep["ew"], prep["w1x"], prep["w2"], prep["b2"],
      prep["w3"], prep["b3"])

    return out[:B, :prep["image_sq"]]


def reference_forward(x, labels, params):
    emb = params["embed"][labels]
    h = jnp.concatenate([x, emb], axis=-1)
    h = jnp.maximum(h @ params["w1"] + params["b1"], 0.0)
    h = jnp.maximum(h @ params["w2"] + params["b2"], 0.0)
    return jnp.tanh(h @ params["w3"] + params["b3"])


if __name__ == "__main__":
    noise_size, hidden_size, image_size, num_classes = 16, 32, 16, 8
    batch = 8

    key = jax.random.PRNGKey(0)
    kx, kl, kp = jax.random.split(key, 3)

    x = jax.random.normal(kx, (batch, noise_size), jnp.float32)
    labels = jax.random.randint(kl, (batch,), 0, num_classes, jnp.int32)

    params = init_params(kp, noise_size, hidden_size, image_size, num_classes)
    prep = prepare_params(params, noise_size, hidden_size, image_size, num_classes)

    out = cgenerator_forward(x, labels, prep)
    out = jax.block_until_ready(out)

    ref = reference_forward(x, labels, params)
    assert out.shape == (batch, image_size ** 2)
    # bf16 matmul operands + bf16 output store (f32 accumulation / f32 tanh)
    # -> loosened tolerance vs f32 reference.
    out_f32 = out.astype(jnp.float32)
    err = float(jnp.max(jnp.abs(out_f32 - ref)))
    assert jnp.allclose(out_f32, ref, atol=5e-2, rtol=0.0), err

    print("KERNEL_OK")
</pallas_src>

<mosaic_0001>
module attributes {stable_mosaic.version = 11 : i64} {
  func.func @cgenerator_kernel(%arg0: i32, %arg1: memref<8x16xbf16, #tpu.memory_space<vmem>>, %arg2: memref<8x1xi32, #tpu.memory_space<vmem>>, %arg3: memref<8x128xf32, #tpu.memory_space<vmem>>, %arg4: memref<16x128xbf16, #tpu.memory_space<vmem>>, %arg5: memref<128x128xbf16, #tpu.memory_space<vmem>>, %arg6: memref<1x128xf32, #tpu.memory_space<vmem>>, %arg7: memref<128x256xbf16, #tpu.memory_space<vmem>>, %arg8: memref<1x256xf32, #tpu.memory_space<vmem>>, %arg9: memref<8x256xbf16, #tpu.memory_space<vmem>>) attributes {dimension_semantics = [#tpu.dimension_semantics<parallel>], iteration_bounds = array<i64: 1>, scalar_prefetch = 0 : i64, scratch_operands = 0 : i64, tpu.core_type = #tpu.core_type<tc>, window_params = [{transform_indices = @transform_0, window_bounds = array<i64: 8, 16>}, {transform_indices = @transform_1, window_bounds = array<i64: 8, 1>}, {pipeline_mode = #tpu.pipeline_mode<synchronous>, transform_indices = @transform_2, window_bounds = array<i64: 8, 128>}, {pipeline_mode = #tpu.pipeline_mode<synchronous>, transform_indices = @transform_3, window_bounds = array<i64: 16, 128>}, {pipeline_mode = #tpu.pipeline_mode<synchronous>, transform_indices = @transform_4, window_bounds = array<i64: 128, 128>}, {pipeline_mode = #tpu.pipeline_mode<synchronous>, transform_indices = @transform_5, window_bounds = array<i64: 1, 128>}, {pipeline_mode = #tpu.pipeline_mode<synchronous>, transform_indices = @transform_6, window_bounds = array<i64: 128, 256>}, {pipeline_mode = #tpu.pipeline_mode<synchronous>, transform_indices = @transform_7, window_bounds = array<i64: 1, 256>}, {transform_indices = @transform_8, window_bounds = array<i64: 8, 256>}]} {
    %c0 = arith.constant 0 : index
    %c0_0 = arith.constant 0 : index
    %0 = vector.load %arg1[%c0, %c0_0] : memref<8x16xbf16, #tpu.memory_space<vmem>>, vector<8x16xbf16>
    %c0_1 = arith.constant 0 : index
    %c0_2 = arith.constant 0 : index
    %1 = vector.load %arg4[%c0_1, %c0_2] : memref<16x128xbf16, #tpu.memory_space<vmem>>, vector<16x128xbf16>
    %cst = arith.constant dense<0.000000e+00> : vector<8x128xf32>
    %2 = tpu.matmul %0, %1, %cst {dimension_numbers = #tpu.dot_dimension_numbers<[1], [0], [0], [1], [0, 0, 1, 1], [], []>} : vector<8x16xbf16>, vector<16x128xbf16>, vector<8x128xf32> -> vector<8x128xf32>
    %3 = tpu.iota {dimensions = array<i32: 1>} : vector<8x8xi32>
    %c0_3 = arith.constant 0 : index
    %c0_4 = arith.constant 0 : index
    %4 = vector.load %arg2[%c0_3, %c0_4] : memref<8x1xi32, #tpu.memory_space<vmem>>, vector<8x1xi32>
    %5 = vector.broadcast %4 : vector<8x1xi32> to vector<8x8xi32>
    %6 = arith.cmpi eq, %3, %5 : vector<8x8xi32>
    %7 = arith.extui %6 : vector<8x8xi1> to vector<8x8xi32>
    %8 = arith.sitofp %7 : vector<8x8xi32> to vector<8x8xf32>
    %c0_5 = arith.constant 0 : index
    %c0_6 = arith.constant 0 : index
    %9 = vector.load %arg3[%c0_5, %c0_6] : memref<8x128xf32, #tpu.memory_space<vmem>>, vector<8x128xf32>
    %cst_7 = arith.constant dense<0.000000e+00> : vector<8x128xf32>
    %10 = tpu.matmul %8, %9, %cst_7 {dimension_numbers = #tpu.dot_dimension_numbers<[1], [0], [0], [1], [0, 0, 1, 1], [], []>} : vector<8x8xf32>, vector<8x128xf32>, vector<8x128xf32> -> vector<8x128xf32>
    %11 = arith.addf %2, %10 : vector<8x128xf32>
    %cst_8 = arith.constant 0.000000e+00 : f32
    %12 = vector.broadcast %cst_8 : f32 to vector<8x128xf32>
    %13 = arith.maximumf %11, %12 : vector<8x128xf32>
    %14 = arith.truncf %13 : vector<8x128xf32> to vector<8x128xbf16>
    %c0_9 = arith.constant 0 : index
    %c0_10 = arith.constant 0 : index
    %15 = vector.load %arg5[%c0_9, %c0_10] : memref<128x128xbf16, #tpu.memory_space<vmem>>, vector<128x128xbf16>
    %cst_11 = arith.constant dense<0.000000e+00> : vector<8x128xf32>
    %16 = tpu.matmul %14, %15, %cst_11 {dimension_numbers = #tpu.dot_dimension_numbers<[1], [0], [0], [1], [0, 0, 1, 1], [], []>} : vector<8x128xbf16>, vector<128x128xbf16>, vector<8x128xf32> -> vector<8x128xf32>
    %c0_12 = arith.constant 0 : index
    %c0_13 = arith.constant 0 : index
    %17 = vector.load %arg6[%c0_12, %c0_13] : memref<1x128xf32, #tpu.memory_space<vmem>>, vector<1x128xf32>
    %18 = vector.broadcast %17 : vector<1x128xf32> to vector<8x128xf32>
    %19 = arith.addf %16, %18 : vector<8x128xf32>
    %cst_14 = arith.constant 0.000000e+00 : f32
    %20 = vector.broadcast %cst_14 : f32 to vector<8x128xf32>
    %21 = arith.maximumf %19, %20 : vector<8x128xf32>
    %22 = arith.truncf %21 : vector<8x128xf32> to vector<8x128xbf16>
    %c0_15 = arith.constant 0 : index
    %c0_16 = arith.constant 0 : index
    %23 = vector.load %arg7[%c0_15, %c0_16] : memref<128x256xbf16, #tpu.memory_space<vmem>>, vector<128x256xbf16>
    %cst_17 = arith.constant dense<0.000000e+00> : vector<8x256xf32>
    %24 = tpu.matmul %22, %23, %cst_17 {dimension_numbers = #tpu.dot_dimension_numbers<[1], [0], [0], [1], [0, 0, 1, 1], [], []>} : vector<8x128xbf16>, vector<128x256xbf16>, vector<8x256xf32> -> vector<8x256xf32>
    %c0_18 = arith.constant 0 : index
    %c0_19 = arith.constant 0 : index
    %25 = vector.load %arg8[%c0_18, %c0_19] : memref<1x256xf32, #tpu.memory_space<vmem>>, vector<1x256xf32>
    %26 = vector.broadcast %25 : vector<1x256xf32> to vector<8x256xf32>
    %27 = arith.addf %24, %26 : vector<8x256xf32>
    %28 = math.tanh %27 : vector<8x256xf32>
    %29 = arith.truncf %28 : vector<8x256xf32> to vector<8x256xbf16>
    %c0_20 = arith.constant 0 : index
    %c0_21 = arith.constant 0 : index
    %30 = vector.load %arg9[%c0_20, %c0_21] : memref<8x256xbf16, #tpu.memory_space<vmem>>, vector<8x256xbf16>
    tpu.vector_store %arg9[%c0_20, %c0_21], %29 {strides = array<i32>} : memref<8x256xbf16, #tpu.memory_space<vmem>>, vector<8x256xbf16>,
    return
  }
  func.func @transform_0(%arg0: i32) -> (i32, i32) {
    %c0_i32 = arith.constant 0 : i32
    %c0_i32_0 = arith.constant 0 : i32
    return %arg0, %c0_i32 : i32, i32
  }
  func.func @transform_1(%arg0: i32) -> (i32, i32) {
    %c0_i32 = arith.constant 0 : i32
    %c0_i32_0 = arith.constant 0 : i32
    return %arg0, %c0_i32 : i32, i32
  }
  func.func @transform_2(%arg0: i32) -> (i32, i32) {
    %c0_i32 = arith.constant 0 : i32
    %c0_i32_0 = arith.constant 0 : i32
    %c0_i32_1 = arith.constant 0 : i32
    return %c0_i32, %c0_i32_0 : i32, i32
  }
  func.func @transform_3(%arg0: i32) -> (i32, i32) {
    %c0_i32 = arith.constant 0 : i32
    %c0_i32_0 = arith.constant 0 : i32
    %c0_i32_1 = arith.constant 0 : i32
    return %c0_i32, %c0_i32_0 : i32, i32
  }
  func.func @transform_4(%arg0: i32) -> (i32, i32) {
    %c0_i32 = arith.constant 0 : i32
    %c0_i32_0 = arith.constant 0 : i32
    %c0_i32_1 = arith.constant 0 : i32
    return %c0_i32, %c0_i32_0 : i32, i32
  }
  func.func @transform_5(%arg0: i32) -> (i32, i32) {
    %c0_i32 = arith.constant 0 : i32
    %c0_i32_0 = arith.constant 0 : i32
    %c0_i32_1 = arith.constant 0 : i32
    return %c0_i32, %c0_i32_0 : i32, i32
  }
  func.func @transform_6(%arg0: i32) -> (i32, i32) {
    %c0_i32 = arith.constant 0 : i32
    %c0_i32_0 = arith.constant 0 : i32
    %c0_i32_1 = arith.constant 0 : i32
    return %c0_i32, %c0_i32_0 : i32, i32
  }
  func.func @transform_7(%arg0: i32) -> (i32, i32) {
    %c0_i32 = arith.constant 0 : i32
    %c0_i32_0 = arith.constant 0 : i32
    %c0_i32_1 = arith.constant 0 : i32
    return %c0_i32, %c0_i32_0 : i32, i32
  }
  func.func @transform_8(%arg0: i32) -> (i32, i32) {
    %c0_i32 = arith.constant 0 : i32
    %c0_i32_0 = arith.constant 0 : i32
    return %arg0, %c0_i32 : i32, i32
  }
}

</mosaic_0001>

<bundles_post_ra>
// kernel: tpu_custom_call.1
= control target key start
LH: loop header
LB: loop body
LE: loop exit
PB: predicated region body
PF: predicated region fallthrough
CT: control target
= control target key end

     0   :  { %13 = vsyncpa [#allocation3], 0  ;;  %s840_s0 = inlined_call_operand.hbm [shape: bf16[8,16], index: 0, kind: input, shape index: {}]   ;;  %s841_s1 = inlined_call_operand.vmem [shape: s32[8,1], index: 1, kind: input, shape index: {}]   ;;  %s842_s2 = inlined_call_operand.vmem [shape: f32[8,128], index: 2, kind: input, shape index: {}]   ;;  %s843_s3 = inlined_call_operand.vmem [shape: bf16[16,128], index: 3, kind: input, shape index: {}]   ;;  %s844_s4 = inlined_call_operand.hbm [shape: bf16[128,128], index: 4, kind: input, shape index: {}]   ;;  %s845_s5 = inlined_call_operand.vmem [shape: f32[1,128], index: 5, kind: input, shape index: {}]   ;;  %s846_s6 = inlined_call_operand.hbm [shape: bf16[128,256], index: 6, kind: input, shape index: {}]   ;;  %s847_s7 = inlined_call_operand.vmem [shape: f32[1,256], index: 7, kind: input, shape index: {}]   ;;  %s848_s8 = inlined_call_operand.hbm [shape: bf16[8,256], index: 8, kind: output, shape index: {}]  }
   0x1   :  { %14 = vsyncpa [#allocation6], 0 }
   0x2   :  { %15 = vsyncpa [#allocation4], 0  ;;  %s716_s27 = smov [#allocation5]   ;;  %s622_s9 = scalar_lea.hbm %s844_s4, 1024 }
   0x3   :  { %s37_s28 = sshll.u32 %s716_s27, 4  ;;  %p623_p0 = scmp.ne.s32.totalorder %s844_s4, %s622_s9  ;;  %s38_s28 = int_to_ptr.vmem [resolvable:$true] %s37_s28 }
   0x4   :  { %p626_p1 = scmp.lt.u32.totalorder %s622_s9, %s844_s4 }
   0x6   :  { %p628_p2 = pnand %p626_p1, %p623_p0 }
   0x8   :  { %631 = shalt.err (!%p628_p2)
}
   0x9   :  { %s632_s14 = scalar_lea.vmem %s38_s28, 1024  ;;  %p637_p4 = scmp.lt.s32.totalorder %s38_s28, %s38_s28 }
   0xa   :  { %p633_p3 = scmp.ne.s32.totalorder %s38_s28, %s632_s14  ;;  %p638_p5 = scmp.lt.s32.totalorder %s632_s14, %s632_s14 }
   0xc   :  { %p639_p6 = por %p638_p5, %p637_p4 }
   0xe   :  { %p640_p7 = pnand %p639_p6, %p633_p3 }
  0x10   :  { %643 = shalt.err (!%p640_p7)
}
  0x11   :  { %s717_s15 = smov 64   ;;  %s718_s16 = smov 4  }
  0x12   :  { %43 = dma.hbm_to_vmem [thread:$0]  %s844_s4, 1024, %s38_s28, [#allocation6], %s717_s15, %s717_s15, %s718_s16  }
  0x13   :  { %s719_s19 = smov [#allocation2]   ;;  %s720_s21 = smov [#allocation7]  }
  0x14   :  { %s22_s20 = sshll.u32 %s719_s19, 4  ;;  %s51_s22 = sshll.u32 %s720_s21, 4  ;;  %s23_s20 = int_to_ptr.vmem [resolvable:$true] %s22_s20  ;;  %s52_s22 = int_to_ptr.vmem [resolvable:$true] %s51_s22 }
  0x15   :  { %s644_s25 = scalar_lea.hbm %s840_s0, 64 }
  0x16   :  { %p645_p8 = scmp.ne.s32.totalorder %s840_s0, %s644_s25  ;;  %p648_p9 = scmp.lt.u32.totalorder %s644_s25, %s840_s0 }
  0x18   :  { %p650_p10 = pnand %p648_p9, %p645_p8 }
  0x1a   :  { %653 = shalt.err (!%p650_p10)
}
  0x1b   :  { %s654_s4 = scalar_lea.vmem %s23_s20, 64  ;;  %p659_p12 = scmp.lt.s32.totalorder %s23_s20, %s23_s20 }
  0x1c   :  { %p655_p11 = scmp.ne.s32.totalorder %s23_s20, %s654_s4  ;;  %p660_p13 = scmp.lt.s32.totalorder %s654_s4, %s654_s4 }
  0x1e   :  { %p661_p0 = por %p660_p13, %p659_p12 }
  0x20   :  { %p662_p1 = pnand %p661_p0, %p655_p11 }
  0x22   :  { %665 = shalt.err (!%p662_p1)
}
  0x23   :  { %25 = dma.hbm_to_vmem [thread:$0]  %s840_s0, 64, %s23_s20, [#allocation3]  }
  0x24   :  { %s666_s12 = scalar_lea.hbm %s846_s6, 2048 }
  0x25   :  { %p667_p2 = scmp.ne.s32.totalorder %s846_s6, %s666_s12  ;;  %p670_p3 = scmp.lt.u32.totalorder %s666_s12, %s846_s6 }
  0x27   :  { %p672_p4 = pnand %p670_p3, %p667_p2 }
  0x29   :  { %675 = shalt.err (!%p672_p4)
}
  0x2a   :  { %s676_s17 = scalar_lea.vmem %s52_s22, 2048  ;;  %p681_p6 = scmp.lt.s32.totalorder %s52_s22, %s52_s22 }
  0x2b   :  { %p677_p5 = scmp.ne.s32.totalorder %s52_s22, %s676_s17  ;;  %p682_p7 = scmp.lt.s32.totalorder %s676_s17, %s676_s17 }
  0x2d   :  { %p683_p8 = por %p682_p7, %p681_p6 }
  0x2f   :  { %p684_p9 = pnand %p683_p8, %p677_p5 }
  0x31   :  { %687 = shalt.err (!%p684_p9)
}
  0x32   :  { %s721_s0 = smov 128   ;;  %s722_s18 = smov 8  }
  0x33   :  { %57 = dma.hbm_to_vmem [thread:$0]  %s846_s6, 2048, %s52_s22, [#allocation6], %s721_s0, %s721_s0, %s722_s18  }
  0x34   :  { %710 = dma.done.wait [#allocation3], 64  }
  0x35   :  { %711 = vsyncadd [#allocation3], 4294967232 }
  0x36   :  { %712 = dma.done.wait [#allocation6], 3072  }
  0x37   :  { %713 = vsyncadd [#allocation6], 4294964224  ;;  %v723_v0 = vmov 0   ;;  %v724_v1 = vmov 0.0   ;;  %vm725_vm0 = vmmov 0   ;;  %v75_v2 = vld [vmem:[%s841_s1] sm:$0xff]  ;;  %v73_v6 = vlaneseq }
  0x38   :  { %584 = vset.pattern.permute.xlu0 %v723_v0  ;;  %547 = vmatprep.subr.bf16.mxu1 %v724_v1  ;;  %v585_v3 = vld [vmem:[%s843_s3] sm:$0xff]   ;;  %vm163_vm1 = vcmask 130048   ;;  %vm83_vm2 = vcmask 64512   ;;  %v587_v11 = vld [vmem:[#allocation5 + $0x8] sm:$0xff]   ;;  %v588_v12 = vld [vmem:[#allocation5 + $0x10] sm:$0xff]  }
  0x39   :  { %549 = vmatprep.mubr.msk.bf16.mxu1 %vm725_vm0, %v724_v1  ;;  %542 = vmatprep.subr.mxu0 %v724_v1  ;;  %v82_v4 = vld [vmem:[%s842_s2] sm:$0xff]  ;;  %v74_v7 = vand.u32 127, %v73_v6  ;;  %v591_v15 = vld [vmem:[#allocation5 + $0x28] sm:$0xff]   ;;  %v592_v16 = vld [vmem:[#allocation5 + $0x30] sm:$0xff]   ;;  %v341_v51 = vshrl.u32 %v73_v6, 7 }
  0x3a   :  { %544 = vmatprep.mubr.msk.f32.mxu0 %vm725_vm0, %v724_v1  ;;  %77 = vperm.xlu0 %584, %v75_v2   ;;  %v70_v5 = vld [vmem:[#allocation2] sm:$0xf]  ;;  %v586_v9 = vld [vmem:[#allocation5] sm:$0xff]   ;;  %v597_v25 = vld [vmem:[#allocation7 + $0x10] ss:$8 sps:$4 sm:$0xff]  }
  0x3b   :  { %543 = vmatpush3.msra.mxu0 %v82_v4  ;;  %548 = vmatpush3.bf16.msra.mxu1 %v585_v3  ;;  %v589_v13 = vld [vmem:[#allocation5 + $0x18] sm:$0xff]   ;;  %v590_v14 = vld [vmem:[#allocation5 + $0x20] sm:$0xff]   ;;  %v342_v52 = vsub.s32 0, %v341_v51  ;;  %v346_v54 = vsub.s32 1, %v341_v51 }
  0x3c   :  { %553 = vmatprep.subr.bf16.mxu0 %v724_v1  ;;  %v593_v17 = vld [vmem:[#allocation5 + $0x38] sm:$0xff]   ;;  %v594_v22 = vld [vmem:[#allocation7] ss:$8 sps:$4 sm:$0xff]   ;;  %v596_v23 = vld [vmem:[#allocation7 + $0x4] ss:$8 sps:$4 sm:$0xff]  }
  0x3d   :  { %v599_v24 = vld [vmem:[#allocation7 + $0x14] ss:$8 sps:$4 sm:$0xff]   ;;  %430 = vmatprep.subr.bf16.mxu1 %v596_v23  ;;  %v602_v26 = vld [vmem:[#allocation7 + $0x24] ss:$8 sps:$4 sm:$0xff]   ;;  %v600_v27 = vld [vmem:[#allocation7 + $0x20] ss:$8 sps:$4 sm:$0xff]  }
  0x3e   :  { %550 = vmatmul.mubr.msk.bf16.vlgmr.msra.gmra.mrb[0].mxu1 %vm163_vm1, %v70_v5  ;;  %v605_v28 = vld [vmem:[#allocation7 + $0x34] ss:$8 sps:$4 sm:$0xff]   ;;  %v603_v29 = vld [vmem:[#allocation7 + $0x30] ss:$8 sps:$4 sm:$0xff]   ;;  %v608_v30 = vld [vmem:[#allocation7 + $0x44] ss:$8 sps:$4 sm:$0xff]  }
  0x3f   :  { %462 = vmatprep.mubr.bf16.mxu1 %v723_v0  ;;  %431 = vmatpush1.bf16.msra.mxu1 %v594_v22  ;;  %v606_v31 = vld [vmem:[#allocation7 + $0x40] ss:$8 sps:$4 sm:$0xff]   ;;  %v611_v32 = vld [vmem:[#allocation7 + $0x54] ss:$8 sps:$4 sm:$0xff]   ;;  %v609_v33 = vld [vmem:[#allocation7 + $0x50] ss:$8 sps:$4 sm:$0xff]  }
  0x40   :  { %432 = vmatprep.subr.bf16.mxu1 %v599_v24  ;;  %v614_v34 = vld [vmem:[#allocation7 + $0x64] ss:$8 sps:$4 sm:$0xff]   ;;  %v612_v35 = vld [vmem:[#allocation7 + $0x60] ss:$8 sps:$4 sm:$0xff]   ;;  %v617_v41 = vld [vmem:[#allocation7 + $0x74] ss:$8 sps:$4 sm:$0xff]  }
  0x41   :  { %v615_v42 = vld [vmem:[#allocation7 + $0x70] ss:$8 sps:$4 sm:$0xff]   ;;  %v502_v43 = vld [vmem:[%s845_s5] ss:$0 sm:$0xff]  ;;  %s726_s5 = smov [#allocation8]  }
  0x42   :  { %v338_v53 = vld [vmem:[%s847_s7] sm:$0x3]  ;;  %s488_s27 = sshll.u32 %s726_s5, 4  ;;  %s489_s27 = int_to_ptr.vmem [resolvable:$true] %s488_s27 }
  0x43   :  { %433 = vmatpush1.bf16.msra.mxu1 %v597_v25  ;;  %v343_v55 = vrot.slane %v338_v53, %v342_v52  ;;  %v347_v56 = vrot.slane %v338_v53, %v346_v54  ;;  %s688_s29 = scalar_lea.vmem %s489_s27, 128  ;;  %p693_p11 = scmp.lt.s32.totalorder %s489_s27, %s489_s27 }
  0x44   :  { %434 = vmatprep.subr.bf16.mxu1 %v602_v26  ;;  %p689_p10 = scmp.ne.s32.totalorder %s489_s27, %s688_s29  ;;  %p694_p12 = scmp.lt.s32.totalorder %s688_s29, %s688_s29 }
  0x46   :  { %p695_p13 = por %p694_p12, %p693_p11 }
  0x47   :  { %435 = vmatpush1.bf16.msra.mxu1 %v600_v27 }
  0x48   :  { %436 = vmatprep.subr.bf16.mxu1 %v605_v28  ;;  %p696_p0 = pnand %p695_p13, %p689_p10 }
  0x4b   :  { %437 = vmatpush1.bf16.msra.mxu1 %v603_v29 }
  0x4c   :  { %438 = vmatprep.subr.bf16.mxu1 %v608_v30 }
  0x4f   :  { %439 = vmatpush1.bf16.msra.mxu1 %v606_v31 }
  0x50   :  { %440 = vmatprep.subr.bf16.mxu1 %v611_v32 }
  0x53   :  { %441 = vmatpush1.bf16.msra.mxu1 %v609_v33 }
  0x54   :  { %442 = vmatprep.subr.bf16.mxu1 %v614_v34 }
  0x57   :  { %443 = vmatpush1.bf16.msra.mxu1 %v612_v35 }
  0x58   :  { %444 = vmatprep.subr.bf16.mxu1 %v617_v41 }
  0x5b   :  { %445 = vmatpush1.bf16.msra.mxu1 %v615_v42 }
  0xb9   :  { %v78_v8 = vpop.permute.xlu0 %77 }
  0xba   :  { %vm79_vm3 = vcmp.eq.s32.totalorder %v74_v7, %v78_v8 }
  0xbb   :  { %v498_v10 = vsel %vm79_vm3, 1.0, %v724_v1 }
  0xbc   :  { %545 = vmatmul.mubr.msk.f32.vlgmr.msra.gmra.mrb[0].mxu0 %vm83_vm2, %v498_v10 }
  0xbd   :  { %554 = vmatpush3.bf16.msra.mxu0 %v586_v9  ;;  %569 = vmatprep.mubr.msk.bf16.mxu0 %vm725_vm0, %v724_v1 }
  0xbe   :  { %555 = vmatprep.subr.bf16.mxu0 %v724_v1 }
  0xc1   :  { %556 = vmatpush3.bf16.msra.mxu0 %v587_v11 }
  0xc2   :  { %557 = vmatprep.subr.bf16.mxu0 %v724_v1 }
  0xc5   :  { %558 = vmatpush3.bf16.msra.mxu0 %v588_v12 }
  0xc6   :  { %559 = vmatprep.subr.bf16.mxu0 %v724_v1 }
  0xc9   :  { %560 = vmatpush3.bf16.msra.mxu0 %v589_v13 }
  0xca   :  { %561 = vmatprep.subr.bf16.mxu0 %v724_v1 }
  0xcd   :  { %562 = vmatpush3.bf16.msra.mxu0 %v590_v14 }
  0xce   :  { %563 = vmatprep.subr.bf16.mxu0 %v724_v1 }
  0xd1   :  { %564 = vmatpush3.bf16.msra.mxu0 %v591_v15 }
  0xd2   :  { %565 = vmatprep.subr.bf16.mxu0 %v724_v1 }
  0xd5   :  { %566 = vmatpush3.bf16.msra.mxu0 %v592_v16 }
  0xd6   :  { %567 = vmatprep.subr.bf16.mxu0 %v724_v1 }
  0xd9   :  { %568 = vmatpush3.bf16.msra.mxu0 %v593_v17 }
 0x111   :  { %v201_v18 = vpop.f32.mrb[0].mxu1 }
 0x112   :  { %v551_v19 = vpop.f32.mrb[1].mxu1 }
 0x113   :  { %v204_v20 = vpop.f32.mrb[2].mxu1 }
 0x114   :  { %v552_v21 = vpop.f32.mrb[3].mxu1 }
 0x18f   :  { %v153_v36 = vpop.f32.mrb[0].mxu0 }
 0x190   :  { %v202_v37 = vadd.f32 %v201_v18, %v153_v36  ;;  %v546_v38 = vpop.f32.mrb[1].mxu0 }
 0x192   :  { %v207_v39 = vmax.f32 %v202_v37, 0.0 }
 0x194   :  { %v208_v40 = vpack.c.bf16 %v207_v39, %v207_v39 }
 0x196   :  { %570 = vmatmul.mubr.bf16.vlgmr.msra.gmra.mrb[4].mxu0 %v208_v40 }
 0x269   :  { %v314_v44 = vpop.f32.mrb[4].mxu0 }
 0x26a   :  { %v315_v45 = vadd.f32 %v502_v43, %v314_v44  ;;  %v571_v46 = vpop.f32.mrb[5].mxu0 }
 0x26b   :  { %v317_v47 = vpop.f32.mrb[6].mxu0 }
 0x26c   :  { %v320_v48 = vmax.f32 %v315_v45, 0.0  ;;  %v572_v49 = vpop.f32.mrb[7].mxu0 }
 0x26e   :  { %v321_v50 = vpack.c.bf16 %v320_v48, %v320_v48 }
 0x270   :  { %463 = vmatmul.mubr.bf16.vlgmr.msra.gmra.mrb[4].mxu1 %v321_v50 }
 0x343   :  { %v464_v57 = vpop.f32.mrb[4].mxu1 }
 0x344   :  { %v465_v58 = vadd.f32 %v464_v57, %v343_v55  ;;  %v466_v59 = vpop.f32.mrb[5].mxu1 }
 0x345   :  { %v467_v60 = vadd.f32 %v466_v59, %v347_v56  ;;  %v468_v61 = vpop.f32.mrb[6].mxu1 }
 0x346   :  { %618 = vtanh.f32 %v465_v58  ;;  %v469_v62 = vpop.f32.mrb[7].mxu1 }
 0x347   :  { %620 = vtanh.f32 %v467_v60 }
 0x350   :  { %v619_v63 = vpop.eup %618 }
 0x351   :  { %v621_v0 = vpop.eup %620 }
 0x352   :  { %v528_v1 = vpack.c.bf16 %v621_v0, %v619_v63 }
 0x354   :  { %481 = vst [vmem:[#allocation8] sm:$0xff] %v528_v1 }
 0x355   :  { %699 = shalt.err (!%p696_p0)
}
 0x356   :  { %s700_s4 = scalar_lea.hbm %s848_s8, 128 }
 0x357   :  { %p701_p1 = scmp.ne.s32.totalorder %s848_s8, %s700_s4  ;;  %p704_p2 = scmp.lt.u32.totalorder %s700_s4, %s848_s8 }
 0x359   :  { %p706_p3 = pnand %p704_p2, %p701_p1 }
 0x35b   :  { %709 = shalt.err (!%p706_p3)
}
 0x35c   :  { %491 = dma.vmem_to_hbm [thread:$0]  %s489_s27, 128, %s848_s8, [#allocation4]  }
 0x35d   :  { %714 = dma.done.wait [#allocation4], 128  }
 0x35e   :  { %715 = vsyncadd [#allocation4], 4294967168 }
 0x35f   :  { %495 = vsyncpa [#allocation3], 1 }
 0x360   :  { %496 = vsyncpa [#allocation6], 1 }
 0x361   :  { %497 = vsyncpa [#allocation4], 1 }

</bundles_post_ra>
